<compile_context>
chip_gen: v7x
topology: tpu7x:2x2x1
jax: 0.10.0
libtpu: 0.0.40
codegen_flags: <defaults>
</compile_context>

<pallas_src>
import functools

import jax
import jax.numpy as jnp
from jax.experimental import pallas as pl
from jax.experimental.pallas import tpu as pltpu


def _round_up(v, m):
    return ((v + m - 1) // m) * m


def _max_margin_loss_kernel(x_ref, bias_ref, tgt_ref, out_ref, *, s, n_true, tm):
    pid = pl.program_id(0)

    x = x_ref[...].astype(jnp.float32)              # (TM, C)  native dtype -> f32 on-vreg
    bias = bias_ref[...]                            # (1, C)   = s*0.1*log(m+1e-7)
    tgt = tgt_ref[...]                              # (TM, 1)  int32

    # logits = s*x + s*0.1*log(m+1e-7) == s*(x + 0.1*log(m+1e-7))
    logits = jnp.float32(s) * x + bias              # (TM, C)

    cls_ids = jax.lax.broadcasted_iota(jnp.int32, logits.shape, 1)

    # numerically stable log-sum-exp over the class (lane) axis
    mx = jnp.max(logits, axis=-1, keepdims=True)                        # (TM, 1)
    lse = jnp.log(jnp.sum(jnp.exp(logits - mx), axis=-1,
                          keepdims=True)) + mx                          # (TM, 1)

    # gather logits[i, target[i]] via compare+select (no int->f32 convert, no multiply)
    tgt_logit = jnp.sum(jnp.where(cls_ids == tgt, logits, jnp.float32(0.0)),
                        axis=-1, keepdims=True)                         # (TM, 1)

    per_sample = lse - tgt_logit                                        # (TM, 1)

    # mask garbage rows of the partial last batch tile (x is unpadded in HBM)
    if n_true % tm != 0:
        row_ids = pid * tm + jax.lax.broadcasted_iota(
            jnp.int32, per_sample.shape, 0)
        per_sample = jnp.where(row_ids < n_true, per_sample, jnp.float32(0.0))

    # lane-dense partial-sum write: one 128-wide row per tile
    tile_sum = jnp.sum(per_sample, axis=0, keepdims=True)               # (1, 1)
    out_ref[...] = jnp.broadcast_to(tile_sum, (1, 128))


def max_margin_loss(x, cls_num_list, target, s=30.0, block_rows=None):
    """x: (N, C) float, cls_num_list: (C,), target: (N,) int -> scalar f32 loss.

    Matches the PyTorch module with its defaults (weight=None, reduction='mean').
    """
    # TODO(synk): per-class `weight` rescaling not implemented (module default is None).
    n, c = x.shape
    itemsize = jnp.dtype(x.dtype).itemsize
    c_lanes = _round_up(c, 128)   # physical lane footprint, used only for VMEM sizing

    if block_rows is None:
        # VMEM budget: 2 double-buffered x tiles + ~3 full-tile f32 temporaries
        # (logits, exp(logits-mx), target-select). ~40 MiB total fits v7x's 64 MiB/TC
        # with headroom; v5e/v6e (128 MiB physical) are always fine.
        per_row_bytes = 2 * c_lanes * itemsize + 3 * c_lanes * 4
        tm = (40 * 1024 * 1024) // per_row_bytes
        tm = max(32, (tm // 32) * 32)
        # v7x megacore: the grid axis is "parallel"; keep >= 2 grid steps when the
        # batch allows so both TensorCores get work (free on v5e/v6e).
        if n > 64:
            tm = min(tm, max(32, _round_up(pl.cdiv(n, 2), 32)))
    else:
        tm = int(block_rows)
    if tm >= n:
        tm = n   # single tile covering the whole batch (block dim == full array dim)

    num_tiles = int(pl.cdiv(n, tm))

    tgt2d = target.astype(jnp.int32).reshape(n, 1)

    # per-class margin bias is a module constant: compute once, (1, C) f32
    m = jnp.asarray(cls_num_list, jnp.float32).reshape(1, c)
    bias = (jnp.float32(s) * jnp.float32(0.1)) * jnp.log(m + jnp.float32(1e-7))

    kernel = functools.partial(
        _max_margin_loss_kernel, s=float(s), n_true=n, tm=tm)

    partial_sums = pl.pallas_call(
        kernel,
        out_shape=jax.ShapeDtypeStruct((num_tiles, 128), jnp.float32),
        grid=(num_tiles,),
        in_specs=[
            pl.BlockSpec((tm, c), lambda i: (i, 0)),   # x tile (native dtype, unpadded)
            pl.BlockSpec((1, c), lambda i: (0, 0)),    # margin bias (pinned)
            pl.BlockSpec((tm, 1), lambda i: (i, 0)),   # target tile
        ],
        out_specs=pl.BlockSpec((1, 128), lambda i: (i, 0)),
        compiler_params=pltpu.CompilerParams(
            dimension_semantics=("parallel",),
            vmem_limit_bytes=48 * 1024 * 1024,
        ),
        cost_estimate=pl.CostEstimate(
            flops=6 * n * c,
            transcendentals=n * c,
            bytes_accessed=(n * c * itemsize + n * 4 + c * 4
                            + num_tiles * 128 * 4),
        ),
    )(x, bias, tgt2d)

    # reduction='mean' over the true batch size
    return jnp.sum(partial_sums[:, 0]) / jnp.float32(n)


def _reference(x, cls_num_list, target, s=30.0):
    m = jnp.asarray(cls_num_list, jnp.float32)
    logits = s * (x.astype(jnp.float32) + 0.1 * jnp.log(m[None, :] + 1e-7))
    logp = jax.nn.log_softmax(logits, axis=-1)
    return -jnp.mean(jnp.take_along_axis(
        logp, target[:, None].astype(jnp.int32), axis=-1))


if __name__ == "__main__":
    key = jax.random.PRNGKey(0)
    k1, k2, k3, k4, k5 = jax.random.split(key, 5)

    # --- small case consistent with the module: batch=8, classes=32 (single tile) ---
    N, C = 8, 32
    cls_num_list = jax.random.uniform(k1, (C,), jnp.float32) * 100.0 + 1.0
    x = jax.random.normal(k2, (N, C), jnp.float32)
    target = jax.random.randint(k3, (N,), 0, C, jnp.int32)

    loss = jax.block_until_ready(max_margin_loss(x, cls_num_list, target, s=30.0))
    ref = _reference(x, cls_num_list, target, s=30.0)
    assert jnp.allclose(loss, ref, rtol=1e-5, atol=1e-5), (loss, ref)

    # --- multi-tile case: non-128 class dim, partial last batch tile, bf16 input ---
    N2, C2 = 100, 200
    cls_num_list2 = jax.random.uniform(k4, (C2,), jnp.float32) * 500.0 + 1.0
    kx, kt = jax.random.split(k5)
    x2 = jax.random.normal(kx, (N2, C2), jnp.bfloat16)   # native bf16 through HBM
    target2 = jax.random.randint(kt, (N2,), 0, C2, jnp.int32)
    ref2 = _reference(x2, cls_num_list2, target2, s=30.0)

    # forced small tile: exercises 4 grid steps + garbage-row masking on the last tile
    loss2 = jax.block_until_ready(
        max_margin_loss(x2, cls_num_list2, target2, s=30.0, block_rows=32))
    assert jnp.allclose(loss2, ref2, rtol=1e-5, atol=1e-4), (loss2, ref2)

    # auto-sized tile: exercises the byte-budget / megacore clamp path (2 tiles of 64)
    loss3 = jax.block_until_ready(
        max_margin_loss(x2, cls_num_list2, target2, s=30.0))
    assert jnp.allclose(loss3, ref2, rtol=1e-5, atol=1e-4), (loss3, ref2)

    print("KERNEL_OK")
</pallas_src>

<mosaic_0001>
module attributes {stable_mosaic.version = 11 : i64} {
  func.func @_max_margin_loss_kernel(%arg0: i32, %arg1: memref<8x32xf32, #tpu.memory_space<vmem>>, %arg2: memref<1x32xf32, #tpu.memory_space<vmem>>, %arg3: memref<8x1xi32, #tpu.memory_space<vmem>>, %arg4: memref<1x128xf32, #tpu.memory_space<vmem>>) attributes {dimension_semantics = [#tpu.dimension_semantics<parallel>], iteration_bounds = array<i64: 1>, scalar_prefetch = 0 : i64, scratch_operands = 0 : i64, tpu.core_type = #tpu.core_type<tc>, window_params = [{transform_indices = @transform_0, window_bounds = array<i64: 8, 32>}, {pipeline_mode = #tpu.pipeline_mode<synchronous>, transform_indices = @transform_1, window_bounds = array<i64: 1, 32>}, {transform_indices = @transform_2, window_bounds = array<i64: 8, 1>}, {transform_indices = @transform_3, window_bounds = array<i64: 1, 128>}]} {
    %c0 = arith.constant 0 : index
    %c0_0 = arith.constant 0 : index
    %0 = vector.load %arg1[%c0, %c0_0] : memref<8x32xf32, #tpu.memory_space<vmem>>, vector<8x32xf32>
    %c0_1 = arith.constant 0 : index
    %c0_2 = arith.constant 0 : index
    %1 = vector.load %arg2[%c0_1, %c0_2] : memref<1x32xf32, #tpu.memory_space<vmem>>, vector<1x32xf32>
    %c0_3 = arith.constant 0 : index
    %c0_4 = arith.constant 0 : index
    %2 = vector.load %arg3[%c0_3, %c0_4] : memref<8x1xi32, #tpu.memory_space<vmem>>, vector<8x1xi32>
    %cst = arith.constant 3.000000e+01 : f32
    %3 = vector.broadcast %cst : f32 to vector<8x32xf32>
    %4 = arith.mulf %3, %0 : vector<8x32xf32>
    %5 = vector.broadcast %1 : vector<1x32xf32> to vector<8x32xf32>
    %6 = arith.addf %4, %5 : vector<8x32xf32>
    %7 = tpu.iota {dimensions = array<i32: 1>} : vector<8x32xi32>
    %cst_5 = arith.constant dense<0xFF800000> : vector<8xf32>
    %8 = vector.multi_reduction <maximumf>, %6, %cst_5 [1] : vector<8x32xf32> to vector<8xf32>
    %9 = vector.shape_cast %8 : vector<8xf32> to vector<8x1xf32>
    %10 = vector.broadcast %9 : vector<8x1xf32> to vector<8x32xf32>
    %11 = arith.subf %6, %10 : vector<8x32xf32>
    %12 = math.exp %11 : vector<8x32xf32>
    %cst_6 = arith.constant dense<0.000000e+00> : vector<8xf32>
    %13 = vector.multi_reduction <add>, %12, %cst_6 [1] : vector<8x32xf32> to vector<8xf32>
    %14 = vector.shape_cast %13 : vector<8xf32> to vector<8x1xf32>
    %15 = math.log %14 : vector<8x1xf32>
    %16 = arith.addf %15, %9 : vector<8x1xf32>
    %17 = vector.broadcast %2 : vector<8x1xi32> to vector<8x32xi32>
    %18 = arith.cmpi eq, %7, %17 : vector<8x32xi32>
    %cst_7 = arith.constant 0.000000e+00 : f32
    %19 = vector.broadcast %cst_7 : f32 to vector<8x32xf32>
    %20 = arith.select %18, %6, %19 : vector<8x32xi1>, vector<8x32xf32>
    %cst_8 = arith.constant dense<0.000000e+00> : vector<8xf32>
    %21 = vector.multi_reduction <add>, %20, %cst_8 [1] : vector<8x32xf32> to vector<8xf32>
    %22 = vector.shape_cast %21 : vector<8xf32> to vector<8x1xf32>
    %23 = arith.subf %16, %22 : vector<8x1xf32>
    %cst_9 = arith.constant dense<0.000000e+00> : vector<1xf32>
    %24 = vector.multi_reduction <add>, %23, %cst_9 [0] : vector<8x1xf32> to vector<1xf32>
    %25 = vector.shape_cast %24 : vector<1xf32> to vector<1x1xf32>
    %26 = vector.shape_cast %25 : vector<1x1xf32> to vector<1x1xf32>
    %27 = vector.broadcast %26 : vector<1x1xf32> to vector<1x128xf32>
    %c0_10 = arith.constant 0 : index
    %c0_11 = arith.constant 0 : index
    %28 = vector.load %arg4[%c0_10, %c0_11] : memref<1x128xf32, #tpu.memory_space<vmem>>, vector<1x128xf32>
    tpu.vector_store %arg4[%c0_10, %c0_11], %27 {strides = array<i32>} : memref<1x128xf32, #tpu.memory_space<vmem>>, vector<1x128xf32>,
    return
  }
  func.func @transform_0(%arg0: i32) -> (i32, i32) {
    %c0_i32 = arith.constant 0 : i32
    %c0_i32_0 = arith.constant 0 : i32
    return %arg0, %c0_i32 : i32, i32
  }
  func.func @transform_1(%arg0: i32) -> (i32, i32) {
    %c0_i32 = arith.constant 0 : i32
    %c0_i32_0 = arith.constant 0 : i32
    %c0_i32_1 = arith.constant 0 : i32
    return %c0_i32, %c0_i32_0 : i32, i32
  }
  func.func @transform_2(%arg0: i32) -> (i32, i32) {
    %c0_i32 = arith.constant 0 : i32
    %c0_i32_0 = arith.constant 0 : i32
    return %arg0, %c0_i32 : i32, i32
  }
  func.func @transform_3(%arg0: i32) -> (i32, i32) {
    %c0_i32 = arith.constant 0 : i32
    %c0_i32_0 = arith.constant 0 : i32
    return %arg0, %c0_i32 : i32, i32
  }
}

</mosaic_0001>

<bundles_post_ra>
// kernel: tpu_custom_call.1
= control target key start
LH: loop header
LB: loop body
LE: loop exit
PB: predicated region body
PF: predicated region fallthrough
CT: control target
= control target key end

     0   :  { %v103_v3 = vmov 0   ;;  %s149_s0 = inlined_call_operand.vmem [shape: f32[8,32], index: 0, kind: input, shape index: {}]   ;;  %s150_s1 = inlined_call_operand.vmem [shape: f32[1,32], index: 1, kind: input, shape index: {}]   ;;  %s151_s2 = inlined_call_operand.vmem [shape: s32[8,1], index: 2, kind: input, shape index: {}]   ;;  %s152_s3 = inlined_call_operand.hbm [shape: f32[1,128], index: 3, kind: output, shape index: {}]  }
   0x1   :  { %v15_v0 = vld [vmem:[%s149_s0] sm:$0xff]  ;;  %74 = vset.pattern.permute.xlu0 %v103_v3 }
   0x2   :  { %v71_v1 = vld [vmem:[%s150_s1] ss:$0 sm:$0xff]  ;;  %v18_v2 = vmul.f32 30.0, %v15_v0 }
   0x3   :  { %8 = vsyncpa [#allocation3], 0  ;;  %vm28_vm0 = vcmask 261120   ;;  %v17_v6 = vld [vmem:[%s151_s2] sm:$0xff]  ;;  %v26_v10 = vlaneseq  ;;  %s104_s0 = smov [#allocation2]  }
   0x4   :  { %v25_v4 = vadd.f32 %v71_v1, %v18_v2  ;;  %s63_s1 = sshll.u32 %s104_s0, 4  ;;  %s64_s1 = int_to_ptr.vmem [resolvable:$true] %s63_s1 }
   0x5   :  { %v27_v11 = vand.u32 127, %v26_v10  ;;  %s79_s2 = scalar_lea.vmem %s64_s1, 16  ;;  %s83_s18 = scalar_lea.vmem %s64_s1, 32 }
   0x6   :  { %v29_v5 = vsel %vm28_vm0, %v25_v4, -inf  ;;  %p80_p0 = scmp.ne.s32.totalorder %s64_s1, %s79_s2  ;;  %p84_p1 = scmp.lt.s32.totalorder %s64_s1, %s64_s1 }
   0x7   :  { %30 = vmax.xlane.f32.xlu0 %v29_v5  ;;  %p85_p2 = scmp.lt.s32.totalorder %s83_s18, %s79_s2 }
   0x9   :  { %p86_p3 = por %p85_p2, %p84_p1 }
   0xb   :  { %p87_p4 = pnand %p86_p3, %p80_p0 }
  0x1d   :  { %42 = vperm.xlu0 %74, %v17_v6  }
  0x94   :  { %v31_v7 = vpop.xlane.xlu0 %30 }
  0x95   :  { %v32_v8 = vsub.f32 %v25_v4, %v31_v7 }
  0x97   :  { %v33_v9 = vmul.f32 1.442695, %v32_v8 }
  0x99   :  { %75 = vpow2.f32 %v33_v9 }
  0x9c   :  { %v43_v12 = vpop.permute.xlu0 %42 }
  0x9d   :  { %vm44_vm1 = vcmp.eq.s32.totalorder %v27_v11, %v43_v12 }
  0x9e   :  { %v45_v14 = vsel %vm44_vm1, %v25_v4, 0.0 }
  0x9f   :  { %v46_v16 = vsel %vm28_vm0, %v45_v14, 0.0 }
  0xa3   :  { %v76_v13 = vpop.eup %75 }
  0xa4   :  { %v35_v15 = vsel %vm28_vm0, %v76_v13, 0.0 }
  0xa5   :  { %36 = vadd.xlane.f32.xlu1 %v35_v15 }
  0xa9   :  { %47 = vadd.xlane.f32.xlu1 %v46_v16 }
 0x132   :  { %v37_v17 = vpop.xlane.xlu1 %36 }
 0x133   :  { %77 = vlog2.f32 %v37_v17 }
 0x136   :  { %v48_v20 = vpop.xlane.xlu1 %47 }
 0x13d   :  { %v78_v18 = vpop.eup %77 }
 0x13e   :  { %v39_v19 = vmul.f32 0.6931472, %v78_v18 }
 0x140   :  { %v40_v21 = vadd.f32 %v39_v19, %v31_v7 }
 0x142   :  { %v49_v22 = vsub.f32 %v40_v21, %v48_v20 }
 0x144   :  { %v50_v23 = vrot.slane %v49_v22, 4 }
 0x146   :  { %v51_v24 = vadd.f32 %v50_v23, %v49_v22 }
 0x148   :  { %v52_v25 = vrot.slane %v51_v24, 2 }
 0x14a   :  { %v53_v26 = vadd.f32 %v52_v25, %v51_v24 }
 0x14c   :  { %v54_v27 = vrot.slane %v53_v26, 1 }
 0x14e   :  { %v55_v28 = vadd.f32 %v54_v27, %v53_v26 }
 0x150   :  { %56 = vst [vmem:[#allocation2] sm:$0x1] %v55_v28 }
 0x151   :  { %90 = shalt.err (!%p87_p4)
}
 0x152   :  { %s91_s21 = scalar_lea.hbm %s152_s3, 16 }
 0x153   :  { %p92_p5 = scmp.ne.s32.totalorder %s152_s3, %s91_s21  ;;  %p95_p6 = scmp.lt.u32.totalorder %s91_s21, %s152_s3 }
 0x155   :  { %p97_p7 = pnand %p95_p6, %p92_p5 }
 0x157   :  { %100 = shalt.err (!%p97_p7)
}
 0x158   :  { %66 = dma.vmem_to_hbm [thread:$0]  %s64_s1, 16, %s152_s3, [#allocation3]  }
 0x159   :  { %101 = dma.done.wait [#allocation3], 16  }
 0x15a   :  { %102 = vsyncadd [#allocation3], 4294967280 }
 0x15b   :  { %70 = vsyncpa [#allocation3], 1 }

</bundles_post_ra>
